<compile_context>
chip_gen: v5e
topology: v5e:2x2
jax: 0.10.0
libtpu: 0.0.40
codegen_flags: <defaults>
</compile_context>

<pallas_src>
import functools

import jax
import jax.numpy as jnp
from jax.experimental import pallas as pl
from jax.experimental.pallas import tpu as pltpu


def _round_up(x, m):
    return ((x + m - 1) // m) * m


def _masked_softmax_entropy(logits, n_valid):
    """Softmax entropy over the first `n_valid` lanes of [1, N_pad] logits."""
    col = jax.lax.broadcasted_iota(jnp.int32, logits.shape, 1)
    valid = col < n_valid
    lm = jnp.where(valid, logits, jnp.float32(-1e30))
    m = jnp.max(lm, axis=-1, keepdims=True)
    e = jnp.where(valid, jnp.exp(lm - m), 0.0)
    s = jnp.sum(e, axis=-1, keepdims=True)
    inv_s = pl.reciprocal(s, approx=True)            # EUP slot, effectively free
    p = e * inv_s
    logp = (lm - m) - jnp.log(s)
    ent = -jnp.sum(jnp.where(valid, p * logp, 0.0), axis=-1, keepdims=True)
    return ent                                        # [1, 1]


def _fused_kernel(p_ref, wc_ref, bc_ref, wfc_ref, bfc_ref, wssh_ref, bssh_ref,
                  out_ref, feat_ref, ssh_ent_ref, out_ent_ref,
                  *, HW, n_cls, n_ssh, use_entropy):
    hw_pad = p_ref.shape[1]
    cfeat_pad = wc_ref.shape[-1]

    # ---- conv3x3 (pad=1) as one dense im2col matmul on the MXU ----
    patches = p_ref[0]                                # [HW_pad, K_pad] bf16
    conv = jnp.dot(patches, wc_ref[...], preferred_element_type=jnp.float32)
    conv = jnp.maximum(conv + bc_ref[...], 0.0)       # ReLU, [HW_pad, Cfeat_pad]

    if hw_pad > HW:  # zero padded rows (bias + ReLU would make them non-zero)
        row = jax.lax.broadcasted_iota(jnp.int32, conv.shape, 0)
        conv = jnp.where(row < HW, conv, 0.0)

    # ---- global average pool -> feature ----
    feat = jnp.sum(conv, axis=0, keepdims=True) * jnp.float32(1.0 / HW)
    feat_ref[...] = feat.reshape(1, 1, cfeat_pad)

    # ---- classifier head + ssh head (bf16 MXU, f32 accumulation) ----
    fb = feat.astype(jnp.bfloat16)
    logits = jnp.dot(fb, wfc_ref[...],
                     preferred_element_type=jnp.float32) + bfc_ref[...]
    out_ref[...] = logits.reshape(1, 1, logits.shape[-1])

    ssh_logits = jnp.dot(fb, wssh_ref[...],
                         preferred_element_type=jnp.float32) + bssh_ref[...]
    ssh_ent = _masked_softmax_entropy(ssh_logits, n_ssh)           # [1, 1]
    ssh_ent_ref[...] = jnp.broadcast_to(ssh_ent.reshape(1, 1, 1),
                                        ssh_ent_ref.shape)

    if use_entropy:  # static flag -> entropy(out) compiled only when needed
        out_ent = _masked_softmax_entropy(logits, n_cls)
        out_ent_ref[...] = jnp.broadcast_to(out_ent.reshape(1, 1, 1),
                                            out_ent_ref.shape)
    else:
        out_ent_ref[...] = jnp.zeros(out_ent_ref.shape, out_ent_ref.dtype)


def _fused_forward_padded(patches, wconv, bconv, wfc, bfc, wssh, bssh,
                          *, HW, n_cls, n_ssh, use_entropy):
    B, hw_pad, k_pad = patches.shape
    cfeat_pad = wconv.shape[-1]
    ncls_pad = wfc.shape[-1]
    nssh_pad = wssh.shape[-1]

    kernel = functools.partial(_fused_kernel, HW=HW, n_cls=n_cls,
                               n_ssh=n_ssh, use_entropy=use_entropy)

    flops = 2 * B * (hw_pad * k_pad * cfeat_pad
                     + cfeat_pad * (ncls_pad + nssh_pad))
    transcendentals = B * (nssh_pad + (ncls_pad if use_entropy else 0) + 8)
    bytes_accessed = (patches.size * 2
                      + (wconv.size + wfc.size + wssh.size) * 2
                      + (bconv.size + bfc.size + bssh.size) * 4
                      + B * (ncls_pad + cfeat_pad + 2 * 128) * 4)

    out_shapes = (
        jax.ShapeDtypeStruct((B, 1, ncls_pad), jnp.float32),   # out logits (padded)
        jax.ShapeDtypeStruct((B, 1, cfeat_pad), jnp.float32),  # feature (padded)
        jax.ShapeDtypeStruct((B, 1, 128), jnp.float32),        # per-sample ssh entropy
        jax.ShapeDtypeStruct((B, 1, 128), jnp.float32),        # per-sample out entropy
    )
    return pl.pallas_call(
        kernel,
        out_shape=out_shapes,
        grid_spec=pltpu.PrefetchScalarGridSpec(
            num_scalar_prefetch=0,
            grid=(B,),
            in_specs=[
                pl.BlockSpec((1, hw_pad, k_pad), lambda b: (b, 0, 0)),
                pl.BlockSpec((k_pad, cfeat_pad), lambda b: (0, 0)),
                pl.BlockSpec((1, cfeat_pad), lambda b: (0, 0)),
                pl.BlockSpec((cfeat_pad, ncls_pad), lambda b: (0, 0)),
                pl.BlockSpec((1, ncls_pad), lambda b: (0, 0)),
                pl.BlockSpec((cfeat_pad, nssh_pad), lambda b: (0, 0)),
                pl.BlockSpec((1, nssh_pad), lambda b: (0, 0)),
            ],
            out_specs=[
                pl.BlockSpec((1, 1, ncls_pad), lambda b: (b, 0, 0)),
                pl.BlockSpec((1, 1, cfeat_pad), lambda b: (b, 0, 0)),
                pl.BlockSpec((1, 1, 128), lambda b: (b, 0, 0)),
                pl.BlockSpec((1, 1, 128), lambda b: (b, 0, 0)),
            ],
        ),
        compiler_params=pltpu.CompilerParams(
            dimension_semantics=("parallel",),
        ),
        cost_estimate=pl.CostEstimate(flops=flops,
                                      transcendentals=transcendentals,
                                      bytes_accessed=bytes_accessed),
    )(patches, wconv, bconv, wfc, bfc, wssh, bssh)


def init_params(key, *, c_in=4, c_feat=32, n_cls=10, n_ssh=4):
    ks = jax.random.split(key, 6)
    s = 0.1
    return {
        "w_conv": s * jax.random.normal(ks[0], (3, 3, c_in, c_feat), jnp.float32),
        "b_conv": s * jax.random.normal(ks[1], (c_feat,), jnp.float32),
        "w_fc":   s * jax.random.normal(ks[2], (c_feat, n_cls), jnp.float32),
        "b_fc":   s * jax.random.normal(ks[3], (n_cls,), jnp.float32),
        "w_ssh":  s * jax.random.normal(ks[4], (c_feat, n_ssh), jnp.float32),
        "b_ssh":  s * jax.random.normal(ks[5], (n_ssh,), jnp.float32),
    }


@functools.partial(jax.jit, static_argnames=("features", "train", "use_entropy"))
def extractor_head_forward(x_nchw, params, *, features=False, train=True,
                           use_entropy=False):
    # layout: x is NCHW (PyTorch); convert to NHWC for the TPU kernel.
    x = jnp.transpose(x_nchw, (0, 2, 3, 1)).astype(jnp.float32)
    B, H, W, c_in = x.shape
    c_feat, n_cls = params["w_fc"].shape
    n_ssh = params["w_ssh"].shape[1]
    HW = H * W
    K = 9 * c_in

    hw_pad = _round_up(HW, 8)
    k_pad = _round_up(K, 128)                  # MXU contraction dim, lane-dense
    cfeat_pad = _round_up(c_feat, 128)
    ncls_pad = _round_up(n_cls, 128)
    nssh_pad = _round_up(n_ssh, 128)

    # Wrapper-side im2col: 9 shifted views of the zero-padded image, channel
    # concat -> [B, HW, 9*Cin]; tiny at these shapes (pure XLA layout glue).
    # TODO(synk): for large H*W/Cin move this inside the kernel with a
    # row-tiled grid axis + pooled-sum accumulator to avoid the 9x HBM blow-up.
    xp = jnp.pad(x, ((0, 0), (1, 1), (1, 1), (0, 0)))
    taps = [xp[:, kh:kh + H, kw:kw + W, :] for kh in range(3) for kw in range(3)]
    patches = jnp.concatenate(taps, axis=-1).reshape(B, HW, K)
    patches = jnp.pad(patches, ((0, 0), (0, hw_pad - HW), (0, k_pad - K)))
    patches = patches.astype(jnp.bfloat16)

    # Zero-pad weights to lane-dense shapes, cast MXU operands to bf16.
    wconv = params["w_conv"].reshape(K, c_feat)                 # (kh,kw,cin) row-major
    wconv = jnp.pad(wconv, ((0, k_pad - K),
                            (0, cfeat_pad - c_feat))).astype(jnp.bfloat16)
    bconv = jnp.pad(params["b_conv"], (0, cfeat_pad - c_feat)).reshape(1, cfeat_pad)
    wfc = jnp.pad(params["w_fc"],
                  ((0, cfeat_pad - c_feat), (0, ncls_pad - n_cls))).astype(jnp.bfloat16)
    bfc = jnp.pad(params["b_fc"], (0, ncls_pad - n_cls)).reshape(1, ncls_pad)
    wssh = jnp.pad(params["w_ssh"],
                   ((0, cfeat_pad - c_feat), (0, nssh_pad - n_ssh))).astype(jnp.bfloat16)
    bssh = jnp.pad(params["b_ssh"], (0, nssh_pad - n_ssh)).reshape(1, nssh_pad)

    out_p, feat_p, ssh_ent, out_ent = _fused_forward_padded(
        patches, wconv, bconv, wfc, bfc, wssh, bssh,
        HW=HW, n_cls=n_cls, n_ssh=n_ssh, use_entropy=use_entropy)

    out = out_p[:, 0, :n_cls]
    feature = feat_p[:, 0, :c_feat]
    ssh_loss = jnp.mean(ssh_ent[:, 0, 0])
    if use_entropy:
        loss_ent = jnp.mean(out_ent[:, 0, 0])
    else:
        loss_ent = jnp.float32(0.0)
    total = ssh_loss + loss_ent

    # TODO(synk): `train` only toggles BN/dropout inside the wrapped net/head in
    # the original code; this synthetic backbone/head has no train-only ops.
    if features:
        return out, feature, total
    return out, total


if __name__ == "__main__":
    key = jax.random.PRNGKey(0)
    pkey, xkey = jax.random.split(key)

    B, C_in, H, W = 2, 4, 16, 16
    params = init_params(pkey, c_in=C_in, c_feat=32, n_cls=10, n_ssh=4)
    x = jax.random.normal(xkey, (B, C_in, H, W), jnp.float32)   # NCHW input

    out, feature, loss = extractor_head_forward(
        x, params, features=True, train=True, use_entropy=True)
    jax.block_until_ready((out, feature, loss))

    out2, loss2 = extractor_head_forward(
        x, params, features=False, train=True, use_entropy=False)
    jax.block_until_ready((out2, loss2))

    assert out.shape == (B, 10)
    assert feature.shape == (B, 32)
    assert loss.shape == ()
    assert out2.shape == (B, 10)
    assert loss2.shape == ()
    print("KERNEL_OK")
</pallas_src>

<mosaic_0001>
module attributes {stable_mosaic.version = 11 : i64} {
  func.func @_fused_kernel(%arg0: i32, %arg1: memref<1x256x128xbf16, #tpu.memory_space<vmem>>, %arg2: memref<128x128xbf16, #tpu.memory_space<vmem>>, %arg3: memref<1x128xf32, #tpu.memory_space<vmem>>, %arg4: memref<128x128xbf16, #tpu.memory_space<vmem>>, %arg5: memref<1x128xf32, #tpu.memory_space<vmem>>, %arg6: memref<128x128xbf16, #tpu.memory_space<vmem>>, %arg7: memref<1x128xf32, #tpu.memory_space<vmem>>, %arg8: memref<1x1x128xf32, #tpu.memory_space<vmem>>, %arg9: memref<1x1x128xf32, #tpu.memory_space<vmem>>, %arg10: memref<1x1x128xf32, #tpu.memory_space<vmem>>, %arg11: memref<1x1x128xf32, #tpu.memory_space<vmem>>) attributes {dimension_semantics = [#tpu.dimension_semantics<parallel>], iteration_bounds = array<i64: 2>, scalar_prefetch = 0 : i64, scratch_operands = 0 : i64, tpu.core_type = #tpu.core_type<tc>, window_params = [{transform_indices = @transform_0, window_bounds = array<i64: 1, 256, 128>}, {pipeline_mode = #tpu.pipeline_mode<synchronous>, transform_indices = @transform_1, window_bounds = array<i64: 128, 128>}, {pipeline_mode = #tpu.pipeline_mode<synchronous>, transform_indices = @transform_2, window_bounds = array<i64: 1, 128>}, {pipeline_mode = #tpu.pipeline_mode<synchronous>, transform_indices = @transform_3, window_bounds = array<i64: 128, 128>}, {pipeline_mode = #tpu.pipeline_mode<synchronous>, transform_indices = @transform_4, window_bounds = array<i64: 1, 128>}, {pipeline_mode = #tpu.pipeline_mode<synchronous>, transform_indices = @transform_5, window_bounds = array<i64: 128, 128>}, {pipeline_mode = #tpu.pipeline_mode<synchronous>, transform_indices = @transform_6, window_bounds = array<i64: 1, 128>}, {transform_indices = @transform_7, window_bounds = array<i64: 1, 1, 128>}, {transform_indices = @transform_8, window_bounds = array<i64: 1, 1, 128>}, {transform_indices = @transform_9, window_bounds = array<i64: 1, 1, 128>}, {transform_indices = @transform_10, window_bounds = array<i64: 1, 1, 128>}]} {
    %c0 = arith.constant 0 : index
    %c0_0 = arith.constant 0 : index
    %c0_1 = arith.constant 0 : index
    %0 = vector.load %arg1[%c0, %c0_0, %c0_1] : memref<1x256x128xbf16, #tpu.memory_space<vmem>>, vector<1x256x128xbf16>
    %1 = vector.shape_cast %0 : vector<1x256x128xbf16> to vector<256x128xbf16>
    %c0_2 = arith.constant 0 : index
    %c0_3 = arith.constant 0 : index
    %2 = vector.load %arg2[%c0_2, %c0_3] : memref<128x128xbf16, #tpu.memory_space<vmem>>, vector<128x128xbf16>
    %cst = arith.constant dense<0.000000e+00> : vector<256x128xf32>
    %3 = tpu.matmul %1, %2, %cst {dimension_numbers = #tpu.dot_dimension_numbers<[1], [0], [0], [1], [0, 0, 1, 1], [], []>} : vector<256x128xbf16>, vector<128x128xbf16>, vector<256x128xf32> -> vector<256x128xf32>
    %c0_4 = arith.constant 0 : index
    %c0_5 = arith.constant 0 : index
    %4 = vector.load %arg3[%c0_4, %c0_5] : memref<1x128xf32, #tpu.memory_space<vmem>>, vector<1x128xf32>
    %5 = vector.broadcast %4 : vector<1x128xf32> to vector<256x128xf32>
    %6 = arith.addf %3, %5 : vector<256x128xf32>
    %cst_6 = arith.constant 0.000000e+00 : f32
    %7 = vector.broadcast %cst_6 : f32 to vector<256x128xf32>
    %8 = arith.maximumf %6, %7 : vector<256x128xf32>
    %cst_7 = arith.constant dense<0.000000e+00> : vector<128xf32>
    %9 = vector.multi_reduction <add>, %8, %cst_7 [0] : vector<256x128xf32> to vector<128xf32>
    %10 = vector.shape_cast %9 : vector<128xf32> to vector<1x128xf32>
    %cst_8 = arith.constant 3.906250e-03 : f32
    %11 = vector.broadcast %cst_8 : f32 to vector<1x128xf32>
    %12 = arith.mulf %10, %11 : vector<1x128xf32>
    %13 = vector.shape_cast %12 : vector<1x128xf32> to vector<1x1x128xf32>
    %c0_9 = arith.constant 0 : index
    %c0_10 = arith.constant 0 : index
    %c0_11 = arith.constant 0 : index
    %14 = vector.load %arg9[%c0_9, %c0_10, %c0_11] : memref<1x1x128xf32, #tpu.memory_space<vmem>>, vector<1x1x128xf32>
    tpu.vector_store %arg9[%c0_9, %c0_10, %c0_11], %13 {strides = array<i32>} : memref<1x1x128xf32, #tpu.memory_space<vmem>>, vector<1x1x128xf32>,
    %15 = arith.truncf %12 : vector<1x128xf32> to vector<1x128xbf16>
    %c0_12 = arith.constant 0 : index
    %c0_13 = arith.constant 0 : index
    %16 = vector.load %arg4[%c0_12, %c0_13] : memref<128x128xbf16, #tpu.memory_space<vmem>>, vector<128x128xbf16>
    %cst_14 = arith.constant dense<0.000000e+00> : vector<1x128xf32>
    %17 = tpu.matmul %15, %16, %cst_14 {dimension_numbers = #tpu.dot_dimension_numbers<[1], [0], [0], [1], [0, 0, 1, 1], [], []>} : vector<1x128xbf16>, vector<128x128xbf16>, vector<1x128xf32> -> vector<1x128xf32>
    %c0_15 = arith.constant 0 : index
    %c0_16 = arith.constant 0 : index
    %18 = vector.load %arg5[%c0_15, %c0_16] : memref<1x128xf32, #tpu.memory_space<vmem>>, vector<1x128xf32>
    %19 = arith.addf %17, %18 : vector<1x128xf32>
    %20 = vector.shape_cast %19 : vector<1x128xf32> to vector<1x1x128xf32>
    %c0_17 = arith.constant 0 : index
    %c0_18 = arith.constant 0 : index
    %c0_19 = arith.constant 0 : index
    %21 = vector.load %arg8[%c0_17, %c0_18, %c0_19] : memref<1x1x128xf32, #tpu.memory_space<vmem>>, vector<1x1x128xf32>
    tpu.vector_store %arg8[%c0_17, %c0_18, %c0_19], %20 {strides = array<i32>} : memref<1x1x128xf32, #tpu.memory_space<vmem>>, vector<1x1x128xf32>,
    %c0_20 = arith.constant 0 : index
    %c0_21 = arith.constant 0 : index
    %22 = vector.load %arg6[%c0_20, %c0_21] : memref<128x128xbf16, #tpu.memory_space<vmem>>, vector<128x128xbf16>
    %cst_22 = arith.constant dense<0.000000e+00> : vector<1x128xf32>
    %23 = tpu.matmul %15, %22, %cst_22 {dimension_numbers = #tpu.dot_dimension_numbers<[1], [0], [0], [1], [0, 0, 1, 1], [], []>} : vector<1x128xbf16>, vector<128x128xbf16>, vector<1x128xf32> -> vector<1x128xf32>
    %c0_23 = arith.constant 0 : index
    %c0_24 = arith.constant 0 : index
    %24 = vector.load %arg7[%c0_23, %c0_24] : memref<1x128xf32, #tpu.memory_space<vmem>>, vector<1x128xf32>
    %25 = arith.addf %23, %24 : vector<1x128xf32>
    %26 = tpu.iota {dimensions = array<i32: 1>} : vector<1x128xi32>
    %c4_i32 = arith.constant 4 : i32
    %27 = vector.broadcast %c4_i32 : i32 to vector<1x128xi32>
    %28 = arith.cmpi slt, %26, %27 : vector<1x128xi32>
    %cst_25 = arith.constant -1.000000e+30 : f32
    %29 = vector.broadcast %cst_25 : f32 to vector<1x128xf32>
    %30 = arith.select %28, %25, %29 : vector<1x128xi1>, vector<1x128xf32>
    %cst_26 = arith.constant dense<0xFF800000> : vector<1xf32>
    %31 = vector.multi_reduction <maximumf>, %30, %cst_26 [1] : vector<1x128xf32> to vector<1xf32>
    %32 = vector.shape_cast %31 : vector<1xf32> to vector<1x1xf32>
    %33 = vector.broadcast %32 : vector<1x1xf32> to vector<1x128xf32>
    %34 = arith.subf %30, %33 : vector<1x128xf32>
    %35 = math.exp %34 : vector<1x128xf32>
    %cst_27 = arith.constant 0.000000e+00 : f32
    %36 = vector.broadcast %cst_27 : f32 to vector<1x128xf32>
    %37 = arith.select %28, %35, %36 : vector<1x128xi1>, vector<1x128xf32>
    %cst_28 = arith.constant dense<0.000000e+00> : vector<1xf32>
    %38 = vector.multi_reduction <add>, %37, %cst_28 [1] : vector<1x128xf32> to vector<1xf32>
    %39 = vector.shape_cast %38 : vector<1xf32> to vector<1x1xf32>
    %40 = tpu.reciprocal %39 {approx = true} : vector<1x1xf32> -> vector<1x1xf32>
    %41 = vector.broadcast %40 : vector<1x1xf32> to vector<1x128xf32>
    %42 = arith.mulf %37, %41 : vector<1x128xf32>
    %43 = vector.broadcast %32 : vector<1x1xf32> to vector<1x128xf32>
    %44 = arith.subf %30, %43 : vector<1x128xf32>
    %45 = math.log %39 : vector<1x1xf32>
    %46 = vector.broadcast %45 : vector<1x1xf32> to vector<1x128xf32>
    %47 = arith.subf %44, %46 : vector<1x128xf32>
    %48 = arith.mulf %42, %47 : vector<1x128xf32>
    %cst_29 = arith.constant 0.000000e+00 : f32
    %49 = vector.broadcast %cst_29 : f32 to vector<1x128xf32>
    %50 = arith.select %28, %48, %49 : vector<1x128xi1>, vector<1x128xf32>
    %cst_30 = arith.constant dense<0.000000e+00> : vector<1xf32>
    %51 = vector.multi_reduction <add>, %50, %cst_30 [1] : vector<1x128xf32> to vector<1xf32>
    %52 = vector.shape_cast %51 : vector<1xf32> to vector<1x1xf32>
    %cst_31 = arith.constant 0.000000e+00 : f32
    %53 = vector.broadcast %cst_31 : f32 to vector<1x1xf32>
    %54 = arith.subf %53, %52 : vector<1x1xf32>
    %55 = vector.shape_cast %54 : vector<1x1xf32> to vector<1x1x1xf32>
    %56 = vector.shape_cast %55 : vector<1x1x1xf32> to vector<1x1x1xf32>
    %57 = vector.broadcast %56 : vector<1x1x1xf32> to vector<1x1x128xf32>
    %c0_32 = arith.constant 0 : index
    %c0_33 = arith.constant 0 : index
    %c0_34 = arith.constant 0 : index
    %58 = vector.load %arg10[%c0_32, %c0_33, %c0_34] : memref<1x1x128xf32, #tpu.memory_space<vmem>>, vector<1x1x128xf32>
    tpu.vector_store %arg10[%c0_32, %c0_33, %c0_34], %57 {strides = array<i32>} : memref<1x1x128xf32, #tpu.memory_space<vmem>>, vector<1x1x128xf32>,
    %59 = tpu.iota {dimensions = array<i32: 1>} : vector<1x128xi32>
    %c10_i32 = arith.constant 10 : i32
    %60 = vector.broadcast %c10_i32 : i32 to vector<1x128xi32>
    %61 = arith.cmpi slt, %59, %60 : vector<1x128xi32>
    %cst_35 = arith.constant -1.000000e+30 : f32
    %62 = vector.broadcast %cst_35 : f32 to vector<1x128xf32>
    %63 = arith.select %61, %19, %62 : vector<1x128xi1>, vector<1x128xf32>
    %cst_36 = arith.constant dense<0xFF800000> : vector<1xf32>
    %64 = vector.multi_reduction <maximumf>, %63, %cst_36 [1] : vector<1x128xf32> to vector<1xf32>
    %65 = vector.shape_cast %64 : vector<1xf32> to vector<1x1xf32>
    %66 = vector.broadcast %65 : vector<1x1xf32> to vector<1x128xf32>
    %67 = arith.subf %63, %66 : vector<1x128xf32>
    %68 = math.exp %67 : vector<1x128xf32>
    %cst_37 = arith.constant 0.000000e+00 : f32
    %69 = vector.broadcast %cst_37 : f32 to vector<1x128xf32>
    %70 = arith.select %61, %68, %69 : vector<1x128xi1>, vector<1x128xf32>
    %cst_38 = arith.constant dense<0.000000e+00> : vector<1xf32>
    %71 = vector.multi_reduction <add>, %70, %cst_38 [1] : vector<1x128xf32> to vector<1xf32>
    %72 = vector.shape_cast %71 : vector<1xf32> to vector<1x1xf32>
    %73 = tpu.reciprocal %72 {approx = true} : vector<1x1xf32> -> vector<1x1xf32>
    %74 = vector.broadcast %73 : vector<1x1xf32> to vector<1x128xf32>
    %75 = arith.mulf %70, %74 : vector<1x128xf32>
    %76 = vector.broadcast %65 : vector<1x1xf32> to vector<1x128xf32>
    %77 = arith.subf %63, %76 : vector<1x128xf32>
    %78 = math.log %72 : vector<1x1xf32>
    %79 = vector.broadcast %78 : vector<1x1xf32> to vector<1x128xf32>
    %80 = arith.subf %77, %79 : vector<1x128xf32>
    %81 = arith.mulf %75, %80 : vector<1x128xf32>
    %cst_39 = arith.constant 0.000000e+00 : f32
    %82 = vector.broadcast %cst_39 : f32 to vector<1x128xf32>
    %83 = arith.select %61, %81, %82 : vector<1x128xi1>, vector<1x128xf32>
    %cst_40 = arith.constant dense<0.000000e+00> : vector<1xf32>
    %84 = vector.multi_reduction <add>, %83, %cst_40 [1] : vector<1x128xf32> to vector<1xf32>
    %85 = vector.shape_cast %84 : vector<1xf32> to vector<1x1xf32>
    %cst_41 = arith.constant 0.000000e+00 : f32
    %86 = vector.broadcast %cst_41 : f32 to vector<1x1xf32>
    %87 = arith.subf %86, %85 : vector<1x1xf32>
    %88 = vector.shape_cast %87 : vector<1x1xf32> to vector<1x1x1xf32>
    %89 = vector.shape_cast %88 : vector<1x1x1xf32> to vector<1x1x1xf32>
    %90 = vector.broadcast %89 : vector<1x1x1xf32> to vector<1x1x128xf32>
    %c0_42 = arith.constant 0 : index
    %c0_43 = arith.constant 0 : index
    %c0_44 = arith.constant 0 : index
    %91 = vector.load %arg11[%c0_42, %c0_43, %c0_44] : memref<1x1x128xf32, #tpu.memory_space<vmem>>, vector<1x1x128xf32>
    tpu.vector_store %arg11[%c0_42, %c0_43, %c0_44], %90 {strides = array<i32>} : memref<1x1x128xf32, #tpu.memory_space<vmem>>, vector<1x1x128xf32>,
    return
  }
  func.func @transform_0(%arg0: i32) -> (i32, i32, i32) {
    %c0_i32 = arith.constant 0 : i32
    %c0_i32_0 = arith.constant 0 : i32
    %c0_i32_1 = arith.constant 0 : i32
    return %arg0, %c0_i32, %c0_i32_0 : i32, i32, i32
  }
  func.func @transform_1(%arg0: i32) -> (i32, i32) {
    %c0_i32 = arith.constant 0 : i32
    %c0_i32_0 = arith.constant 0 : i32
    %c0_i32_1 = arith.constant 0 : i32
    return %c0_i32, %c0_i32_0 : i32, i32
  }
  func.func @transform_2(%arg0: i32) -> (i32, i32) {
    %c0_i32 = arith.constant 0 : i32
    %c0_i32_0 = arith.constant 0 : i32
    %c0_i32_1 = arith.constant 0 : i32
    return %c0_i32, %c0_i32_0 : i32, i32
  }
  func.func @transform_3(%arg0: i32) -> (i32, i32) {
    %c0_i32 = arith.constant 0 : i32
    %c0_i32_0 = arith.constant 0 : i32
    %c0_i32_1 = arith.constant 0 : i32
    return %c0_i32, %c0_i32_0 : i32, i32
  }
  func.func @transform_4(%arg0: i32) -> (i32, i32) {
    %c0_i32 = arith.constant 0 : i32
    %c0_i32_0 = arith.constant 0 : i32
    %c0_i32_1 = arith.constant 0 : i32
    return %c0_i32, %c0_i32_0 : i32, i32
  }
  func.func @transform_5(%arg0: i32) -> (i32, i32) {
    %c0_i32 = arith.constant 0 : i32
    %c0_i32_0 = arith.constant 0 : i32
    %c0_i32_1 = arith.constant 0 : i32
    return %c0_i32, %c0_i32_0 : i32, i32
  }
  func.func @transform_6(%arg0: i32) -> (i32, i32) {
    %c0_i32 = arith.constant 0 : i32
    %c0_i32_0 = arith.constant 0 : i32
    %c0_i32_1 = arith.constant 0 : i32
    return %c0_i32, %c0_i32_0 : i32, i32
  }
  func.func @transform_7(%arg0: i32) -> (i32, i32, i32) {
    %c0_i32 = arith.constant 0 : i32
    %c0_i32_0 = arith.constant 0 : i32
    %c0_i32_1 = arith.constant 0 : i32
    return %arg0, %c0_i32, %c0_i32_0 : i32, i32, i32
  }
  func.func @transform_8(%arg0: i32) -> (i32, i32, i32) {
    %c0_i32 = arith.constant 0 : i32
    %c0_i32_0 = arith.constant 0 : i32
    %c0_i32_1 = arith.constant 0 : i32
    return %arg0, %c0_i32, %c0_i32_0 : i32, i32, i32
  }
  func.func @transform_9(%arg0: i32) -> (i32, i32, i32) {
    %c0_i32 = arith.constant 0 : i32
    %c0_i32_0 = arith.constant 0 : i32
    %c0_i32_1 = arith.constant 0 : i32
    return %arg0, %c0_i32, %c0_i32_0 : i32, i32, i32
  }
  func.func @transform_10(%arg0: i32) -> (i32, i32, i32) {
    %c0_i32 = arith.constant 0 : i32
    %c0_i32_0 = arith.constant 0 : i32
    %c0_i32_1 = arith.constant 0 : i32
    return %arg0, %c0_i32, %c0_i32_0 : i32, i32, i32
  }
}

</mosaic_0001>

<bundles_post_ra>
// kernel: extractor_head_forward.1
= control target key start
LH: loop header
LB: loop body
LE: loop exit
PB: predicated region body
PF: predicated region fallthrough
CT: control target
= control target key end

     0   :  { %s1871_s0 = inlined_call_operand.vmem [shape: bf16[2,256,128], index: 0, kind: input, shape index: {}]   ;;  %s1872_s1 = inlined_call_operand.vmem [shape: bf16[128,128], index: 1, kind: input, shape index: {}]   ;;  %s1873_s2 = inlined_call_operand.vmem [shape: f32[1,128], index: 2, kind: input, shape index: {}]   ;;  %s1874_s3 = inlined_call_operand.vmem [shape: bf16[128,128], index: 3, kind: input, shape index: {}]   ;;  %s1875_s4 = inlined_call_operand.vmem [shape: f32[1,128], index: 4, kind: input, shape index: {}]   ;;  %s1876_s5 = inlined_call_operand.vmem [shape: bf16[128,128], index: 5, kind: input, shape index: {}]   ;;  %s1877_s6 = inlined_call_operand.vmem [shape: f32[1,128], index: 6, kind: input, shape index: {}]   ;;  %s1878_s7 = inlined_call_operand.hbm [shape: f32[2,1,128], index: 7, kind: output, shape index: {0}]   ;;  %s1879_s8 = inlined_call_operand.hbm [shape: f32[2,1,128], index: 8, kind: output, shape index: {1}]   ;;  %s1880_s9 = inlined_call_operand.vmem [shape: f32[2,1,128], index: 9, kind: output, shape index: {2}]   ;;  %s1881_s10 = inlined_call_operand.vmem [shape: f32[2,1,128], index: 10, kind: output, shape index: {3}]  }
   0x1   :  { %1883 = sst [smem:[#allocation8_spill]] %s1871_s0 }
   0x2   :  { %1884 = sst [smem:[#allocation9_spill]] %s1872_s1 }
   0x3   :  { %1885 = sst [smem:[#allocation10_spill]] %s1873_s2 }
   0x4   :  { %16 = vsyncpa [#allocation3], 0 }
   0x5   :  { %18 = vsyncpa [#allocation3 + $0x1], 0 }
   0x6   :  { %19 = vsyncpa [#allocation5], 0 }
   0x7   :  { %21 = vsyncpa [#allocation5 + $0x1], 0  ;;  %s1552_s13 = smov 0   ;;  %s1554_s14 = smov 0  }
   0x8   :  { %s1556_s15 = smov 0   ;;  %s1558_s16 = smov 0  }
   0x9 LB: > { %s1573_s17 = sadd.s32 4294967295, %s1495_s16   ;;  %s1111_s18 = sadd.s32 4294967294, %s1495_s16   ;;  %s1495_s16 = sphi %s1558_s16, %s1895_s16   ;;  %s1491_s15 = sphi %s1556_s15, %s1894_s15   ;;  %s1487_s14 = sphi %s1554_s14, %s1893_s14   ;;  %s1483_s13 = sphi %s1552_s13, %s1892_s13  }
   0xa   : > { %s1577_s19 = sadd.s32 1, %s1495_s16   ;;  %s186_s20 = sadd.s32 1, %s1491_s15 }
   0xb   : > { %s183_s21 = ssub.s32 %s1495_s16, %s1577_s19  ;;  %p196_p0 = scmp.ne.s32.totalorder %s1491_s15, %s1487_s14 }
   0xc   : > { %p184_p1 = scmp.eq.s32.totalorder %s183_s21, 0  ;;  %p197_p2 = scmp.eq.s32.totalorder %s1573_s17, 1 }
   0xd   : > { %p202_p3 = scmp.ne.s32.totalorder %s1487_s14, %s1483_s13  ;;  %p203_p4 = scmp.eq.s32.totalorder %s1111_s18, 1 }
   0xe   : > { %s1588_s22 = scalar_select %p184_p1, %s1491_s15, %s186_s20  }
   0xf   : > { %p1590_p5 = por %p197_p2, %p196_p0  ;;  %p1594_p6 = por %p203_p4, %p202_p3 }
  0x10   : > { %p1114_p7 = scmp.ge.s32.totalorder %s1495_s16, 1  ;;  %p325_p8 = scmp.lt.s32.totalorder %s1495_s16, 3 }
  0x12   : > { %p326_p9 = pnand %p1114_p7, %p325_p8 }
  0x13   : > { %s1888_s1 = sld [smem:[#allocation9_spill]] (!%p326_p9)  ;;  %p372_p10 = scmp.lt.s32.totalorder (!%p326_p9), %s1573_s17, 1 }
  0x14   : > { %329 = sbr.rel (%p326_p9) target bundleno = 856 (0x358), region = 48  ;;  %s1889_s0 = sld [smem:[#allocation8_spill]] (!%p326_p9) }
  0x15   : > { %s1890_s2 = sld [smem:[#allocation10_spill]] (!%p326_p9)  ;;  %s967_s28 = scalar_lea.hbm (!%p326_p9), %s1878_s7, %s1573_s17 }
  0x19   : > { %v1303_v0 = vld [vmem:[%s1888_s1 + $0x38] sm:$0xff]  ;;  %v1302_v1 = vld [vmem:[%s1888_s1 + $0x30] sm:$0xff]  ;;  %v1301_v2 = vld [vmem:[%s1888_s1 + $0x28] sm:$0xff]  ;;  %s1620_s26 = scalar_select %p372_p10, %s1573_s17, 1  ;;  %vm901_vm1 = vcmask 1040384  }
  0x1a   : > { %579 = vmatpush.bf16.msra.mxu0 %v1303_v0  ;;  %1321 = vmatpush.bf16.msra.mxu2 %v1303_v0  ;;  %v1300_v3 = vld [vmem:[%s1888_s1 + $0x20] sm:$0xff]  ;;  %v1299_v4 = vld [vmem:[%s1888_s1 + $0x18] sm:$0xff]  ;;  %v1298_v5 = vld [vmem:[%s1888_s1 + $0x10] sm:$0xff] }
  0x1b   : > { %1322 = vmatpush.bf16.msra.mxu3 %v1303_v0  ;;  %1320 = vmatpush.bf16.msra.mxu1 %v1303_v0  ;;  %v1297_v6 = vld [vmem:[%s1888_s1 + $0x8] sm:$0xff]  ;;  %s1279_s29 = sshll.u32 %s1620_s26, 7  ;;  %v1296_v7 = vld [vmem:[%s1888_s1] sm:$0xff]  ;;  %v1319_v63 = vld [vmem:[%s1876_s5 + $0x38] sm:$0xff] }
  0x1c   : > { %s1632_s20 = scalar_lea.vmem %s1889_s0, %s1279_s29  ;;  %v1665_v38 = vld [vmem:[%s1890_s2] ss:$0 sm:$0xff]  ;;  %s1772_s29 = sand.u32 1, %s1487_s14  }
  0x1d   : > { %v1280_v8 = vld [vmem:[%s1632_s20] sm:$0xff]  ;;  %v1287_v9 = vld [vmem:[%s1632_s20 + $0x38] sm:$0xff]  ;;  %v1281_v11 = vld [vmem:[%s1632_s20 + $0x8] sm:$0xff]  ;;  %s1882_s30 = scalar_lea.vmem [#allocation4], %s1772_s29  ;;  %s355_s18 = scalar_lea.vmem [#allocation2], %s1772_s29 }
  0x1e   : > { %580 = vmatpush.bf16.msra.mxu0 %v1302_v1  ;;  %1324 = vmatpush.bf16.msra.mxu2 %v1302_v1  ;;  %v1291_v10 = vld [vmem:[%s1632_s20 + $0x58] sm:$0xff]  ;;  %v1288_v12 = vld [vmem:[%s1632_s20 + $0x40] sm:$0xff]  ;;  %v1285_v14 = vld [vmem:[%s1632_s20 + $0x28] sm:$0xff]  ;;  %s969_s21 = sshll.u32 %s355_s18, 4  ;;  %s949_s25 = scalar_lea.sflag [#allocation3], %s1772_s29  ;;  %s970_s21 = int_to_ptr.vmem [resolvable:$true] %s969_s21 }
  0x1f   : > { %1325 = vmatpush.bf16.msra.mxu3 %v1302_v1  ;;  %1323 = vmatpush.bf16.msra.mxu1 %v1302_v1  ;;  %v1292_v13 = vld [vmem:[%s1632_s20 + $0x60] sm:$0xff]  ;;  %v1282_v15 = vld [vmem:[%s1632_s20 + $0x10] sm:$0xff]  ;;  %v1289_v16 = vld [vmem:[%s1632_s20 + $0x48] sm:$0xff] }
  0x20   : > { %v1293_v17 = vld [vmem:[%s1632_s20 + $0x68] sm:$0xff]  ;;  %v1286_v18 = vld [vmem:[%s1632_s20 + $0x30] sm:$0xff]  ;;  %v1283_v19 = vld [vmem:[%s1632_s20 + $0x18] sm:$0xff] }
  0x21   : > { %v1290_v20 = vld [vmem:[%s1632_s20 + $0x50] sm:$0xff]  ;;  %v1284_v22 = vld [vmem:[%s1632_s20 + $0x20] sm:$0xff]  ;;  %v1295_v23 = vld [vmem:[%s1632_s20 + $0x78] sm:$0xff] }
  0x22   : > { %581 = vmatpush.bf16.msra.mxu0 %v1301_v2  ;;  %1327 = vmatpush.bf16.msra.mxu2 %v1301_v2  ;;  %v1294_v21 = vld [vmem:[%s1632_s20 + $0x70] sm:$0xff]  ;;  %s980_s20 = scalar_lea.hbm %s1879_s8, %s1573_s17 }
  0x23   : > { %1328 = vmatpush.bf16.msra.mxu3 %v1301_v2  ;;  %1326 = vmatpush.bf16.msra.mxu1 %v1301_v2 }
  0x26   : > { %582 = vmatpush.bf16.msra.mxu0 %v1300_v3  ;;  %1330 = vmatpush.bf16.msra.mxu2 %v1300_v3 }
  0x27   : > { %1331 = vmatpush.bf16.msra.mxu3 %v1300_v3  ;;  %1329 = vmatpush.bf16.msra.mxu1 %v1300_v3 }
  0x2a   : > { %583 = vmatpush.bf16.msra.mxu0 %v1299_v4  ;;  %1333 = vmatpush.bf16.msra.mxu2 %v1299_v4 }
  0x2b   : > { %1334 = vmatpush.bf16.msra.mxu3 %v1299_v4  ;;  %1332 = vmatpush.bf16.msra.mxu1 %v1299_v4  ;;  %v1318_v4 = vld [vmem:[%s1876_s5 + $0x30] sm:$0xff] }
  0x2e   : > { %584 = vmatpush.bf16.msra.mxu0 %v1298_v5  ;;  %1336 = vmatpush.bf16.msra.mxu2 %v1298_v5 }
  0x2f   : > { %1337 = vmatpush.bf16.msra.mxu3 %v1298_v5  ;;  %1335 = vmatpush.bf16.msra.mxu1 %v1298_v5 }
  0x32   : > { %585 = vmatpush.bf16.msra.mxu0 %v1297_v6  ;;  %1339 = vmatpush.bf16.msra.mxu2 %v1297_v6 }
  0x33   : > { %1340 = vmatpush.bf16.msra.mxu3 %v1297_v6  ;;  %1338 = vmatpush.bf16.msra.mxu1 %v1297_v6 }
  0x36   : > { %586 = vmatpush.bf16.msra.mxu0 %v1296_v7  ;;  %1342 = vmatpush.bf16.msra.mxu2 %v1296_v7 }
  0x37   : > { %1343 = vmatpush.bf16.msra.mxu3 %v1296_v7  ;;  %1341 = vmatpush.bf16.msra.mxu1 %v1296_v7 }
  0x39   : > { %587 = vmatmul.bf16.vlgmr.msra.gmra.mxu0 %v1280_v8  ;;  %622 = vmatmul.bf16.vlgmr.msra.gmra.mxu2 %v1287_v9 }
  0x3a   : > { %642 = vmatmul.bf16.vlgmr.msra.gmra.mxu3 %v1291_v10  ;;  %612 = vmatmul.bf16.vlgmr.msra.gmra.mxu1 %v1285_v14 }
  0x3b   : > { %884 = vmatpush.bf16.msrb.mxu2 %v1319_v63 }
  0x3f   : > { %885 = vmatpush.bf16.msrb.mxu2 %v1318_v4 }
  0x49   : > { %592 = vmatmul.bf16.gmra.mxu0 %v1281_v11  ;;  %627 = vmatmul.bf16.gmra.mxu2 %v1288_v12 }
  0x4a   : > { %647 = vmatmul.bf16.gmra.mxu3 %v1292_v13  ;;  %617 = vmatmul.bf16.gmra.mxu1 %v1286_v18 }
  0x59   : > { %597 = vmatmul.bf16.gmra.mxu0 %v1282_v15  ;;  %632 = vmatmul.bf16.gmra.mxu2 %v1289_v16  ;;  %v1311_v15 = vld [vmem:[%s1874_s3 + $0x38] sm:$0xff] }
  0x5a   : > { %652 = vmatmul.bf16.gmra.mxu3 %v1293_v17  ;;  %805 = vmatpush.bf16.msrb.mxu1 %v1311_v15 }
  0x69   : > { %602 = vmatmul.bf16.gmra.mxu0 %v1283_v19  ;;  %637 = vmatmul.bf16.gmra.mxu2 %v1290_v20  ;;  %v1317_v19 = vld [vmem:[%s1876_s5 + $0x28] sm:$0xff] }
  0x6a   : > { %657 = vmatmul.bf16.gmra.mxu3 %v1294_v21  ;;  %886 = vmatpush.bf16.msrb.mxu2 %v1317_v19 }
  0x79   : > { %607 = vmatmul.bf16.gmra.mxu0 %v1284_v22 }
  0x7a   : > { %662 = vmatmul.bf16.gmra.mxu3 %v1295_v23 }
  0xb6   : > { %v588_v24 = vpop.f32.mrf.mxu0 }
  0xb7   : > { %v613_v36 = vpop.f32.mrf.mxu1  ;;  %v589_v42 = vadd.f32 %v1665_v38, %v588_v24  ;;  %v1310_v24 = vld [vmem:[%s1874_s3 + $0x30] sm:$0xff] }
  0xb8   : > { %v614_v12 = vadd.f32 %v1665_v38, %v613_v36  ;;  %806 = vmatpush.bf16.msrb.mxu1 %v1310_v24 }
  0xb9   : > { %v668_v48 = vmax.f32 %v589_v42, 0.0  ;;  %v1309_v42 = vld [vmem:[%s1874_s3 + $0x28] sm:$0xff] }
  0xba   : > { %v678_v21 = vmax.f32 %v614_v12, 0.0 }
  0xbc   : > { %v1650_v27 = vpop.f32.mrf.mxu2  ;;  %807 = vmatpush.bf16.msrb.mxu1 %v1309_v42 }
  0xbd   : > { %v1652_v28 = vpop.f32.mrf.mxu3 }
  0xbe   : > { %v590_v25 = vpop.f32.mrf.mxu0 }
  0xbf   : > { %v591_v41 = vadd.f32 %v1665_v38, %v590_v25  ;;  %v615_v45 = vpop.f32.mrf.mxu1 }
  0xc0   : > { %v616_v16 = vadd.f32 %v1665_v38, %v615_v45 }
  0xc1   : > { %v669_v46 = vmax.f32 %v591_v41, 0.0 }
  0xc2   : > { %v679_v25 = vmax.f32 %v616_v16, 0.0 }
  0xc3   : > { %v700_v51 = vadd.f32 %v669_v46, %v668_v48  ;;  %v1316_v48 = vld [vmem:[%s1876_s5 + $0x20] sm:$0xff] }
  0xc4   : > { %v1654_v30 = vpop.f32.mrf.mxu2  ;;  %887 = vmatpush.bf16.msrb.mxu2 %v1316_v48 }
  0xc5   : > { %v1656_v32 = vpop.f32.mrf.mxu3 }
  0xc6   : > { %v593_v26 = vpop.f32.mrf.mxu0 }
  0xc7   : > { %v594_v43 = vadd.f32 %v1665_v38, %v593_v26  ;;  %v618_v0 = vpop.f32.mrf.mxu1 }
  0xc8   : > { %v619_v22 = vadd.f32 %v1665_v38, %v618_v0 }
  0xc9   : > { %v670_v49 = vmax.f32 %v594_v43, 0.0  ;;  %v626_v43 = vadd.f32 %v1665_v38, %v1654_v30 }
  0xcb   : > { %v701_v56 = vadd.f32 %v700_v51, %v670_v49  ;;  %v1308_v49 = vld [vmem:[%s1874_s3 + $0x20] sm:$0xff] }
  0xcc   : > { %v1658_v34 = vpop.f32.mrf.mxu2  ;;  %808 = vmatpush.bf16.msrb.mxu1 %v1308_v49 }
  0xcd   : > { %v1660_v35 = vpop.f32.mrf.mxu3 }
  0xce   : > { %v595_v29 = vpop.f32.mrf.mxu0  ;;  %v649_v16 = vadd.f32 %v1665_v38, %v1660_v35 }
  0xcf   : > { %v596_v47 = vadd.f32 %v1665_v38, %v595_v29  ;;  %v620_v20 = vpop.f32.mrf.mxu1 }
  0xd0   : > { %v621_v29 = vadd.f32 %v1665_v38, %v620_v20 }
  0xd1   : > { %v671_v52 = vmax.f32 %v596_v47, 0.0  ;;  %v629_v47 = vadd.f32 %v1665_v38, %v1658_v34 }
  0xd3   : > { %v702_v60 = vadd.f32 %v701_v56, %v671_v52  ;;  %v1315_v52 = vld [vmem:[%s1876_s5 + $0x18] sm:$0xff]  ;;  %v684_v34 = vmax.f32 %v629_v47, 0.0 }
  0xd4   : > { %v1667_v39 = vpop.f32.mrf.mxu2  ;;  %888 = vmatpush.bf16.msrb.mxu2 %v1315_v52 }
  0xd5   : > { %v1669_v40 = vpop.f32.mrf.mxu3  ;;  %v631_v30 = vadd.f32 %v1665_v38, %v1667_v39 }
  0xd6   : > { %v598_v31 = vpop.f32.mrf.mxu0 }
  0xd7   : > { %v599_v50 = vadd.f32 %v1665_v38, %v598_v31  ;;  %v624_v31 = vadd.f32 %v1665_v38, %v1650_v27 }
  0xd9   : > { %v672_v57 = vmax.f32 %v599_v50, 0.0  ;;  %v682_v46 = vmax.f32 %v624_v31, 0.0  ;;  %v683_v50 = vmax.f32 %v626_v43, 0.0 }
  0xdb   : > { %v703_v1 = vadd.f32 %v702_v60, %v672_v57  ;;  %v1307_v57 = vld [vmem:[%s1874_s3 + $0x18] sm:$0xff] }
  0xdc   : > { %v1677_v54 = vpop.f32.mrf.mxu2  ;;  %809 = vmatpush.bf16.msrb.mxu1 %v1307_v57 }
  0xdd   : > { %v1679_v55 = vpop.f32.mrf.mxu3 }
  0xde   : > { %v600_v33 = vpop.f32.mrf.mxu0 }
  0xdf   : > { %v601_v53 = vadd.f32 %v1665_v38, %v600_v33  ;;  %v680_v33 = vmax.f32 %v619_v22, 0.0  ;;  %v654_v22 = vadd.f32 %v1665_v38, %v1679_v55 }
  0xe1   : > { %v673_v61 = vmax.f32 %v601_v53, 0.0  ;;  %v634_v53 = vadd.f32 %v1665_v38, %v1677_v54  ;;  %v1314_v54 = vld [vmem:[%s1876_s5 + $0x10] sm:$0xff]  ;;  %v694_v35 = vmax.f32 %v654_v22, 0.0 }
  0xe2   : > { %889 = vmatpush.bf16.msrb.mxu2 %v1314_v54 }
  0xe3   : > { %v704_v5 = vadd.f32 %v703_v1, %v673_v61  ;;  %v1306_v1 = vld [vmem:[%s1874_s3 + $0x10] sm:$0xff] }
  0xe4   : > { %v635_v9 = vpop.f32.mrf.mxu2  ;;  %810 = vmatpush.bf16.msrb.mxu1 %v1306_v1 }
  0xe5   : > { %v1690_v11 = vpop.f32.mrf.mxu3 }
  0xe6   : > { %v603_v37 = vpop.f32.mrf.mxu0 }
  0xe7   : > { %v604_v58 = vadd.f32 %v1665_v38, %v603_v37 }
  0xe9   : > { %v674_v2 = vmax.f32 %v604_v58, 0.0  ;;  %v685_v58 = vmax.f32 %v631_v30, 0.0 }
  0xeb   : > { %v705_v7 = vadd.f32 %v704_v5, %v674_v2  ;;  %v644_v5 = vadd.f32 %v1665_v38, %v1652_v28  ;;  %v1312_v28 = vld [vmem:[%s1876_s5] sm:$0xff] }
  0xec   : > { %v638_v37 = vpop.f32.mrf.mxu2 }
  0xed   : > { %v1708_v41 = vpop.f32.mrf.mxu3  ;;  %v639_v0 = vadd.f32 %v1665_v38, %v638_v37  ;;  %v690_v15 = vmax.f32 %v644_v5, 0.0 }
  0xee   : > { %v605_v44 = vpop.f32.mrf.mxu0 }
  0xef   : > { %v606_v62 = vadd.f32 %v1665_v38, %v605_v44  ;;  %v681_v44 = vmax.f32 %v621_v29, 0.0  ;;  %v659_v29 = vadd.f32 %v1665_v38, %v1708_v41 }
  0xf1   : > { %v675_v6 = vmax.f32 %v606_v62, 0.0  ;;  %v686_v62 = vmax.f32 %v634_v53, 0.0  ;;  %v696_v42 = vmax.f32 %v659_v29, 0.0 }
  0xf3   : > { %v706_v13 = vadd.f32 %v705_v7, %v675_v6  ;;  %v688_v7 = vmax.f32 %v639_v0, 0.0 }
  0xf4   : > { %v640_v60 = vpop.f32.mrf.mxu2 }
  0xf5   : > { %v660_v61 = vpop.f32.mrf.mxu3  ;;  %v641_v4 = vadd.f32 %v1665_v38, %v640_v60 }
  0xf6   : > { %v608_v59 = vpop.f32.mrf.mxu0 }
  0xf7   : > { %v609_v3 = vadd.f32 %v1665_v38, %v608_v59  ;;  %v636_v59 = vadd.f32 %v1665_v38, %v635_v9  ;;  %v1305_v9 = vld [vmem:[%s1874_s3 + $0x8] sm:$0xff] }
  0xf8   : > { %811 = vmatpush.bf16.msrb.mxu1 %v1305_v9 }
  0xf9   : > { %v676_v8 = vmax.f32 %v609_v3, 0.0  ;;  %v687_v2 = vmax.f32 %v636_v59, 0.0 }
  0xfb   : > { %v707_v17 = vadd.f32 %v706_v13, %v676_v8  ;;  %v1313_v8 = vld [vmem:[%s1876_s5 + $0x8] sm:$0xff]  ;;  %v689_v13 = vmax.f32 %v641_v4, 0.0 }
  0xfc   : > { %890 = vmatpush.bf16.msrb.mxu2 %v1313_v8 }
  0xfe   : > { %v610_v10 = vpop.f32.mrf.mxu0 }
  0xff   : > { %v611_v14 = vadd.f32 %v1665_v38, %v610_v10  ;;  %v646_v10 = vadd.f32 %v1665_v38, %v1656_v32  ;;  %v651_v32 = vadd.f32 %v1665_v38, %v1669_v40  ;;  %v661_v40 = vadd.f32 %v1665_v38, %v660_v61 }
 0x100   : > { %891 = vmatpush.bf16.msrb.mxu2 %v1312_v28 }
 0x101   : > { %v677_v18 = vmax.f32 %v611_v14, 0.0  ;;  %v1304_v14 = vld [vmem:[%s1874_s3] sm:$0xff]  ;;  %v691_v19 = vmax.f32 %v646_v10, 0.0  ;;  %v693_v24 = vmax.f32 %v651_v32, 0.0 }
 0x102   : > { %812 = vmatpush.bf16.msrb.mxu1 %v1304_v14 }
 0x103   : > { %v708_v23 = vadd.f32 %v707_v17, %v677_v18  ;;  %v663_v18 = vpop.f32.mrf.mxu3 }
 0x104   : > { %v664_v55 = vadd.f32 %v1665_v38, %v663_v18 }
 0x105   : > { %v709_v26 = vadd.f32 %v708_v23, %v678_v21  ;;  %v692_v21 = vmax.f32 %v649_v16, 0.0 }
 0x106   : > { %v698_v47 = vmax.f32 %v664_v55, 0.0 }
 0x107   : > { %v710_v36 = vadd.f32 %v709_v26, %v679_v25  ;;  %v656_v25 = vadd.f32 %v1665_v38, %v1690_v11 }
 0x109   : > { %v711_v45 = vadd.f32 %v710_v36, %v680_v33  ;;  %v695_v33 = vmax.f32 %v656_v25, 0.0 }
 0x10b   : > { %v712_v27 = vadd.f32 %v711_v45, %v681_v44  ;;  %v665_v37 = vpop.f32.mrf.mxu3  ;;  %v697_v44 = vmax.f32 %v661_v40, 0.0 }
 0x10c   : > { %v666_v11 = vadd.f32 %v1665_v38, %v665_v37  ;;  %v756_v38 = vld [vmem:[%s1875_s4] sm:$0x1] }
 0x10d   : > { %v713_v51 = vadd.f32 %v712_v27, %v682_v46 }
 0x10e   : > { %v699_v48 = vmax.f32 %v666_v11, 0.0 }
 0x10f   : > { %v714_v56 = vadd.f32 %v713_v51, %v683_v50 }
 0x111   : > { %v715_v39 = vadd.f32 %v714_v56, %v684_v34 }
 0x113   : > { %v716_v63 = vadd.f32 %v715_v39, %v685_v58  ;;  %v897_v58 = vlaneseq  ;;  %v835_v39 = vld [vmem:[%s1877_s6] sm:$0x1] }
 0x115   : > { %v717_v3 = vadd.f32 %v716_v63, %v686_v62  ;;  %v1786_v60 = vand.u32 127, %v897_v58 }
 0x117   : > { %v718_v6 = vadd.f32 %v717_v3, %v687_v2  ;;  %vm899_vm0 = vcmp.lt.s32.totalorder %v1786_v60, 4  ;;  %vm924_vm2 = vcmp.lt.s32.totalorder %v1786_v60, 10 }
 0x119   : > { %v719_v12 = vadd.f32 %v718_v6, %v688_v7 }
 0x11b   : > { %v720_v17 = vadd.f32 %v719_v12, %v689_v13 }
 0x11d   : > { %v721_v20 = vadd.f32 %v720_v17, %v690_v15 }
 0x11f   : > { %v722_v23 = vadd.f32 %v721_v20, %v691_v19 }
 0x121   : > { %v723_v26 = vadd.f32 %v722_v23, %v692_v21 }
 0x123   : > { %v724_v31 = vadd.f32 %v723_v26, %v693_v24 }
 0x125   : > { %v725_v36 = vadd.f32 %v724_v31, %v694_v35 }
 0x127   : > { %v726_v43 = vadd.f32 %v725_v36, %v695_v33 }
 0x129   : > { %v727_v45 = vadd.f32 %v726_v43, %v696_v42 }
 0x12b   : > { %v728_v46 = vadd.f32 %v727_v45, %v697_v44 }
 0x12d   : > { %v729_v27 = vadd.f32 %v728_v46, %v698_v47 }
 0x12f   : > { %v730_v41 = vadd.f32 %v729_v27, %v699_v48 }
 0x131   : > { %v731_v49 = vrot.slane %v730_v41, 4 }
 0x133   : > { %v732_v50 = vadd.f32 %v731_v49, %v730_v41 }
 0x135   : > { %v733_v30 = vrot.slane %v732_v50, 2 }
 0x137   : > { %v734_v51 = vadd.f32 %v733_v30, %v732_v50 }
 0x139   : > { %v735_v52 = vrot.slane %v734_v51, 1 }
 0x13b   : > { %v736_v34 = vadd.f32 %v735_v52, %v734_v51 }
 0x13d   : > { %v737_v53 = vmul.f32 0.00390625, %v736_v34 }
 0x13f   : > { %v739_v56 = vpack.c.bf16 %v737_v53, %v737_v53  ;;  %738 = vst [vmem:[%s1882_s30] sm:$0x1] %v737_v53  ;;  %s971_s30 = sshll.u32 %s967_s28, 4  ;;  %s1421_s28 = scalar_lea.hbm %s1878_s7, 2  ;;  %s972_s30 = int_to_ptr.hbm [resolvable:$true] %s971_s30 }
 0x140   : > { %s1415_s27 = sshra.s32 %s972_s30, 4  ;;  %s1416_s27 = int_to_ptr.hbm [resolvable:$true] %s1415_s27 }
 0x141   : > { %813 = vmatmul.bf16.vlgmr.msrb.gmra.mxu1 %v739_v56  ;;  %892 = vmatmul.bf16.vlgmr.msrb.gmra.mxu2 %v739_v56  ;;  %s1417_s0 = scalar_lea.hbm %s1416_s27, 1  ;;  %p1422_p0 = scmp.lt.s32.totalorder %s1416_s27, %s1878_s7 }
 0x142   : > { %p1418_p11 = scmp.ne.s32.totalorder %s1416_s27, %s1417_s0  ;;  %p1423_p1 = scmp.lt.s32.totalorder %s1421_s28, %s1417_s0 }
 0x144   : > { %p1419_p12 = pnand %p1418_p11, %p1590_p5  ;;  %p1424_p2 = por %p1423_p1, %p1422_p0 }
 0x146   : > { %p1420_p13 = pneg %p1419_p12 }
 0x148   : > { %p1425_p3 = pnand %p1424_p2, %p1420_p13 }
 0x1be   : > { %v814_v57 = vpop.f32.mrf.mxu1 }
 0x1bf   : > { %v815_v59 = vadd.f32 %v814_v57, %v756_v38 }
 0x1c1   : > { %818 = vst [vmem:[%s355_s18] sm:$0x1] %v815_v59  ;;  %v925_v2 = vsel %vm924_vm2, %v815_v59, -1e+30 }
 0x1c2   : > { %v926_v3 = vsel %vm901_vm1, %v925_v2, -inf }
 0x1c4   : > { %v893_v61 = vpop.f32.mrf.mxu2 }
 0x1c5   : > { %v894_v62 = vadd.f32 %v893_v61, %v835_v39 }
 0x1c6   : > { %v816_v63 = vpop.f32.mrf.mxu1 }
 0x1c7   : > { %v900_v0 = vsel %vm899_vm0, %v894_v62, -1e+30 }
 0x1c8   : > { %v902_v54 = vsel %vm901_vm1, %v900_v0, -inf }
 0x1c9   : > { %903 = vmax.xlane.f32.xlu0 %v902_v54 }
 0x1cc   : > { %v895_v1 = vpop.f32.mrf.mxu2 }
 0x1d1   : > { %927 = vmax.xlane.f32.xlu0 %v926_v3 }
 0x23c   : > { %v904_v4 = vpop.xlane.xlu0 %903 }
 0x23d   : > { %v905_v5 = vsub.f32 %v900_v0, %v904_v4 }
 0x23f   : > { %v906_v6 = vmul.f32 1.442695, %v905_v5 }
 0x241   : > { %1389 = vpow2.f32 %v906_v6 }
 0x244   : > { %v928_v7 = vpop.xlane.xlu0 %927 }
 0x245   : > { %v1796_v8 = vsub.f32 %v925_v2, %v928_v7 }
 0x247   : > { %v1390_v9 = vpop.eup %1389  ;;  %v930_v10 = vmul.f32 1.442695, %v1796_v8 }
 0x248   : > { %v908_v12 = vsel %vm899_vm0, %v1390_v9, 0.0 }
 0x249   : > { %1391 = vpow2.f32 %v930_v10  ;;  %v909_v13 = vsel %vm901_vm1, %v908_v12, 0.0 }
 0x24a   : > { %910 = vadd.xlane.f32.xlu1 %v909_v13 }
 0x24f   : > { %v1392_v28 = vpop.eup %1391 }
 0x250   : > { %v932_v14 = vsel %vm924_vm2, %v1392_v28, 0.0 }
 0x251   : > { %v933_v15 = vsel %vm901_vm1, %v932_v14, 0.0 }
 0x252   : > { %934 = vadd.xlane.f32.xlu1 %v933_v15 }
 0x2bd   : > { %v911_v16 = vpop.xlane.xlu1 %910 }
 0x2be   : > { %1393 = vrcp.f32 %v911_v16 }
 0x2bf   : > { %1395 = vlog2.f32 %v911_v16 }
 0x2c4   : > { %v1394_v17 = vpop.eup %1393 }
 0x2c5   : > { %v1396_v18 = vpop.eup %1395  ;;  %v935_v19 = vpop.xlane.xlu1 %934  ;;  %v913_v20 = vmul.f32 %v1394_v17, %v908_v12 }
 0x2c6   : > { %v915_v32 = vmul.f32 0.6931472, %v1396_v18  ;;  %1397 = vrcp.f32 %v935_v19 }
 0x2c7   : > { %1399 = vlog2.f32 %v935_v19 }
 0x2c8   : > { %v916_v21 = vsub.f32 %v905_v5, %v915_v32 }
 0x2ca   : > { %v917_v22 = vmul.f32 %v916_v21, %v913_v20 }
 0x2cc   : > { %v1398_v23 = vpop.eup %1397  ;;  %v918_v24 = vsel %vm899_vm0, %v917_v22, 0.0 }
 0x2cd   : > { %v1400_v25 = vpop.eup %1399  ;;  %v919_v26 = vsel %vm901_vm1, %v918_v24, 0.0 }
 0x2ce   : > { %1428 = shalt.err (!%p1425_p3)
}
 0x2cf   : > { %1344 = dma.vmem_to_hbm [thread:$0]  (%p1590_p5), %s970_s21, 16, %s972_s30, %s949_s25   ;;  %v939_v35 = vmul.f32 0.6931472, %v1400_v25  ;;  %920 = vadd.xlane.f32.xlu2 %v919_v26  ;;  %v937_v31 = vmul.f32 %v1398_v23, %v932_v14 }
 0x2d0   : > { %s1891_s1 = scalar_lea.vmem [#allocation4], %s1772_s29  ;;  %s984_s17 = sshll.u32 %s980_s20, 4  ;;  %s985_s17 = int_to_ptr.hbm [resolvable:$true] %s984_s17 }
 0x2d1   : > { %s982_s2 = sshll.u32 %s1891_s1, 4  ;;  %v940_v29 = vsub.f32 %v1796_v8, %v939_v35  ;;  %s953_s0 = scalar_lea.sflag [#allocation5], %s1772_s29  ;;  %s983_s2 = int_to_ptr.vmem [resolvable:$true] %s982_s2 }
 0x2d2   : > { %s1443_s27 = sshra.s32 %s985_s17, 4  ;;  %s1449_s21 = scalar_lea.hbm %s1879_s8, 2  ;;  %s1444_s27 = int_to_ptr.hbm [resolvable:$true] %s1443_s27 }
 0x2d3   : > { %s1445_s18 = scalar_lea.hbm %s1444_s27, 1  ;;  %p1450_p9 = scmp.lt.s32.totalorder %s1444_s27, %s1879_s8 }
 0x2d4   : > { %p1446_p4 = scmp.ne.s32.totalorder %s1444_s27, %s1445_s18  ;;  %p1451_p10 = scmp.lt.s32.totalorder %s1449_s21, %s1445_s18 }
 0x2d6   : > { %p1447_p7 = pnand %p1446_p4, %p1590_p5  ;;  %p1452_p11 = por %p1451_p10, %p1450_p9 }
 0x2d8   : > { %p1448_p8 = pneg %p1447_p7 }
 0x2da   : > { %p1453_p12 = pnand %p1452_p11, %p1448_p8 }
 0x2dc   : > { %1456 = shalt.err (!%p1453_p12)
}
 0x2dd   : > { %1345 = dma.vmem_to_hbm [thread:$0]  (%p1590_p5), %s983_s2, 16, %s985_s17, %s953_s0   ;;  %v941_v33 = vmul.f32 %v940_v29, %v937_v31 }
 0x2de   : > { %s379_s11 = scalar_lea.vmem %s1880_s9, %s1620_s26  ;;  %s382_s23 = scalar_lea.vmem %s1881_s10, %s1620_s26 }
 0x2df   : > { %v942_v40 = vsel %vm924_vm2, %v941_v33, 0.0 }
 0x2e0   : > { %v943_v36 = vsel %vm901_vm1, %v942_v40, 0.0 }
 0x2e1   : > { %944 = vadd.xlane.f32.xlu2 %v943_v36 }
 0x342   : > { %v921_v37 = vpop.xlane.xlu2 %920 }
 0x343   : > { %v922_v42 = vsub.f32 0.0, %v921_v37 }
 0x345   : > { %923 = vst [vmem:[%s379_s11] sm:$0x1] %v922_v42 }
 0x354   : > { %v945_v43 = vpop.xlane.xlu2 %944 }
 0x355   : > { %v946_v55 = vsub.f32 0.0, %v945_v43 }
 0x357   : > { %947 = vst [vmem:[%s382_s23] sm:$0x1] %v946_v55 }
 0x358 PF: > { %p1355_p5 = scmp.ge.s32.totalorder %s1495_s16, 2  ;;  %s1002_s2 = sand.u32 1, %s1483_s13  }
 0x359   : > { %s1003_s17 = scalar_lea.sflag [#allocation3], %s1002_s2 }
 0x35a   : > { %p1349_p13 = pnand %p1355_p5, %p1594_p6 }
 0x35c   : > { %p1350_p0 = pneg %p1349_p13 }
 0x35e   : > { %1474 = dma.done.wait (%p1350_p0), %s1003_s17, 16  }
 0x35f   : > { %1476 = vsyncadd (%p1350_p0), %s1003_s17, 4294967280  ;;  %s1012_s0 = scalar_lea.sflag [#allocation5], %s1002_s2 }
 0x360   : > { %1478 = dma.done.wait (%p1350_p0), %s1012_s0, 16  }
 0x361   : > { %1480 = vsyncadd (%p1350_p0), %s1012_s0, 4294967280  ;;  %p24_p1 = scmp.ge.s32.totalorder %s1577_s19, 4   ;;  %s1892_s13 = smov %s1487_s14 }
 0x362   : > { %s1893_s14 = smov %s1491_s15  ;;  %s1894_s15 = smov %s1588_s22 }
 0x363   : > { %s1895_s16 = smov %s1577_s19  ;;  %26 = sbr.rel (!%p24_p1) target bundleno = 9 (0x9), region = 124 }
 0x368   :  { %1029 = vsyncpa [#allocation3], 1 }
 0x369   :  { %1031 = vsyncpa [#allocation3 + $0x1], 1 }
 0x36a   :  { %1032 = vsyncpa [#allocation5], 1 }
 0x36b   :  { %1034 = vsyncpa [#allocation5 + $0x1], 1 }

</bundles_post_ra>
